<compile_context>
chip_gen: v5e
topology: v5e:2x2
jax: 0.10.0
libtpu: 0.0.40
codegen_flags: <defaults>
</compile_context>

<pallas_src>
import jax
import jax.numpy as jnp
from jax.experimental import pallas as pl
from jax.experimental.pallas import tpu as pltpu

NUM_CLASSES = 10          # config.num_classes (synthetic)
FEAT_DIM = 55             # Linear(55, num_classes) in add_block
LANE = 128                # TPU lane width (output N padded to this)
SUBLANE = 8               # f32 sublane count (batch block is a multiple)


def _round_up(n, m):
    return ((n + m - 1) // m) * m


def _fused_kernel(x_ref, beat_ref, w_x_ref, w_b_ref, out_ref):
    """One batch-block of: pool(x) ++ beat ++ 1 -> fused linear.

    x_ref:    [TB, C*H*W]     f32  (pooling is pre-folded into w_x)
    beat_ref: [TB, D_beat+1]  f32  (trailing constant-1 column carries bias)
    w_x_ref:  [C*H*W, 128]    f32  (= repeat(w_pool, H*W, axis=0) / (H*W))
    w_b_ref:  [D_beat+1, 128] f32  (last row is the fused bias)
    out_ref:  [TB, 128]       f32
    """
    # Pool + first half of the fused linear as one lane-dense MXU matmul
    # (K = C*H*W); the mean's reduction rides the MXU, not the XLU.
    acc = jnp.dot(x_ref[...], w_x_ref[...],
                  preferred_element_type=jnp.float32)            # [TB, 128]
    # Tiny-K matmul for the beat half; its ones column adds the fused bias.
    acc = acc + jnp.dot(beat_ref[...], w_b_ref[...],
                        preferred_element_type=jnp.float32)      # [TB, 128]
    # Full [TB, 128] lane-dense, unmasked tile store.
    out_ref[...] = acc


def _fused_forward(x_flat, beat_aug, w_x, w_b, tb):
    b, kx = x_flat.shape
    _, kb = beat_aug.shape
    grid_b = pl.cdiv(b, tb)
    b_out = grid_b * tb                      # padded output rows (tiny; sliced off)

    flops = 2 * b_out * (kx + kb) * LANE
    bytes_accessed = 4 * (x_flat.size + beat_aug.size
                          + w_x.size + w_b.size + b_out * LANE)

    return pl.pallas_call(
        _fused_kernel,
        out_shape=jax.ShapeDtypeStruct((b_out, LANE), jnp.float32),
        grid_spec=pltpu.PrefetchScalarGridSpec(
            num_scalar_prefetch=0,
            grid=(grid_b,),
            in_specs=[
                pl.BlockSpec((tb, kx), lambda i: (i, 0)),     # x: batch-blocked
                pl.BlockSpec((tb, kb), lambda i: (i, 0)),     # beat+1: batch-blocked
                pl.BlockSpec((kx, LANE), lambda i: (0, 0)),   # w_x: resident
                pl.BlockSpec((kb, LANE), lambda i: (0, 0)),   # w_beat: resident
            ],
            out_specs=pl.BlockSpec((tb, LANE), lambda i: (i, 0)),
        ),
        compiler_params=pltpu.CompilerParams(
            # Batch blocks are independent -> shard across v7x's 2 TensorCores.
            dimension_semantics=("parallel",),
        ),
        cost_estimate=pl.CostEstimate(flops=flops, transcendentals=0,
                                      bytes_accessed=bytes_accessed),
    )(x_flat, beat_aug, w_x, w_b)


def mymodel_forward(x, beat, fused_params):
    """x: [B, C, H, W] NCHW, beat: [B, D_beat] -> logits [B, NUM_CLASSES]."""
    B, C, H, W = x.shape

    # Metadata-only reshape (no HBM copy): pooling is folded into w_x, so the
    # x operand is just the flat [B, C*H*W] view.
    x_flat = x.reshape(B, C * H * W)

    # Append a constant-1 column to the (tiny) beat operand; it multiplies the
    # fused-bias row of w_beat inside the kernel.
    beat_aug = jnp.concatenate(
        [beat.astype(jnp.float32), jnp.ones((B, 1), jnp.float32)], axis=1)

    # Batch block: sublane-aligned; ragged last block is garbage-in/garbage-out
    # and sliced off below (no jnp.pad of x -> no extra HBM copy of x).
    tb = min(128, _round_up(B, SUBLANE))

    out_padded = _fused_forward(x_flat, beat_aug,
                                fused_params["w_x"], fused_params["w_beat"], tb)
    # Slice back to the real batch and the real number of classes.
    return out_padded[:B, :NUM_CLASSES]


def init_params(key, d_in):
    k1, k2, k3, k4 = jax.random.split(key, 4)
    # Stand-in backbone head: d_in -> 55
    w1 = jax.random.normal(k1, (d_in, FEAT_DIM), jnp.float32) * 0.05
    b1 = jax.random.normal(k2, (1, FEAT_DIM), jnp.float32) * 0.01
    # add_block: Linear(55, num_classes)
    w2 = jax.random.normal(k3, (FEAT_DIM, NUM_CLASSES), jnp.float32) * 0.05
    b2 = jax.random.normal(k4, (1, NUM_CLASSES), jnp.float32) * 0.01
    return {"w1": w1, "b1": b1, "w2": w2, "b2": b2}


def prepare_fused_params(params, num_channels, hw):
    """One-time parameter preprocessing (outside the forward path).

    * Folds backbone-head Linear and add_block Linear into one weight/bias
      (valid: no nonlinearity between them).
    * Zero-pads the output (lane) dim to 128.
    * Folds the global-average-pool (including the 1/(H*W)) into the x weight:
      w_x[c*HW + s, :] = w_pool[c, :] / HW, so x can be fed as [B, C*HW].
    * Folds the bias as an extra row of the beat weight (paired with the
      constant-1 column appended to beat in the wrapper).
    """
    w_fused = params["w1"] @ params["w2"]                       # [D_in, NUM_CLASSES]
    b_fused = params["b1"] @ params["w2"] + params["b2"]        # [1,    NUM_CLASSES]
    d_in, n = w_fused.shape
    w_pad = jnp.zeros((d_in, LANE), jnp.float32).at[:, :n].set(w_fused)
    b_pad = jnp.zeros((1, LANE), jnp.float32).at[:, :n].set(b_fused)

    w_pool = w_pad[:num_channels]                               # [C,      128]
    w_beat = w_pad[num_channels:]                               # [D_beat, 128]

    w_x = jnp.repeat(w_pool, hw, axis=0) / float(hw)            # [C*HW,   128]
    w_beat_aug = jnp.concatenate([w_beat, b_pad], axis=0)       # [D_beat+1, 128]
    return {"w_x": w_x, "w_beat": w_beat_aug}


if __name__ == "__main__":
    key = jax.random.PRNGKey(0)
    kx, kb, kp = jax.random.split(key, 3)

    B, C, H, W = 2, 4, 16, 16
    D_BEAT = 8

    x = jax.random.normal(kx, (B, C, H, W), jnp.float32)
    beat = jax.random.normal(kb, (B, D_BEAT), jnp.float32)
    params = init_params(kp, C + D_BEAT)
    fused = prepare_fused_params(params, C, H * W)

    fwd = jax.jit(mymodel_forward)
    out = jax.block_until_ready(fwd(x, beat, fused))
    assert out.shape == (B, NUM_CLASSES), out.shape

    # Reference: the original un-fused two-linear forward in plain JAX.
    pooled = jnp.mean(x, axis=(2, 3))
    feat_in = jnp.concatenate([pooled, beat], axis=1)
    ref = (feat_in @ params["w1"] + params["b1"]) @ params["w2"] + params["b2"]
    assert jnp.allclose(out, ref, atol=1e-4, rtol=1e-4), float(jnp.max(jnp.abs(out - ref)))

    print("KERNEL_OK")
</pallas_src>

<mosaic_0001>
module attributes {stable_mosaic.version = 11 : i64} {
  func.func @_fused_kernel(%arg0: i32, %arg1: memref<8x1024xf32, #tpu.memory_space<vmem>>, %arg2: memref<8x9xf32, #tpu.memory_space<vmem>>, %arg3: memref<1024x128xf32, #tpu.memory_space<vmem>>, %arg4: memref<9x128xf32, #tpu.memory_space<vmem>>, %arg5: memref<8x128xf32, #tpu.memory_space<vmem>>) attributes {dimension_semantics = [#tpu.dimension_semantics<parallel>], iteration_bounds = array<i64: 1>, scalar_prefetch = 0 : i64, scratch_operands = 0 : i64, tpu.core_type = #tpu.core_type<tc>, window_params = [{transform_indices = @transform_0, window_bounds = array<i64: 8, 1024>}, {transform_indices = @transform_1, window_bounds = array<i64: 8, 9>}, {pipeline_mode = #tpu.pipeline_mode<synchronous>, transform_indices = @transform_2, window_bounds = array<i64: 1024, 128>}, {pipeline_mode = #tpu.pipeline_mode<synchronous>, transform_indices = @transform_3, window_bounds = array<i64: 9, 128>}, {transform_indices = @transform_4, window_bounds = array<i64: 8, 128>}]} {
    %c0 = arith.constant 0 : index
    %c0_0 = arith.constant 0 : index
    %0 = vector.load %arg1[%c0, %c0_0] : memref<8x1024xf32, #tpu.memory_space<vmem>>, vector<8x1024xf32>
    %c0_1 = arith.constant 0 : index
    %c0_2 = arith.constant 0 : index
    %1 = vector.load %arg3[%c0_1, %c0_2] : memref<1024x128xf32, #tpu.memory_space<vmem>>, vector<1024x128xf32>
    %cst = arith.constant dense<0.000000e+00> : vector<8x128xf32>
    %2 = tpu.matmul %0, %1, %cst {dimension_numbers = #tpu.dot_dimension_numbers<[1], [0], [0], [1], [0, 0, 1, 1], [], []>} : vector<8x1024xf32>, vector<1024x128xf32>, vector<8x128xf32> -> vector<8x128xf32>
    %c0_3 = arith.constant 0 : index
    %c0_4 = arith.constant 0 : index
    %3 = vector.load %arg2[%c0_3, %c0_4] : memref<8x9xf32, #tpu.memory_space<vmem>>, vector<8x9xf32>
    %c0_5 = arith.constant 0 : index
    %c0_6 = arith.constant 0 : index
    %4 = vector.load %arg4[%c0_5, %c0_6] : memref<9x128xf32, #tpu.memory_space<vmem>>, vector<9x128xf32>
    %cst_7 = arith.constant dense<0.000000e+00> : vector<8x128xf32>
    %5 = tpu.matmul %3, %4, %cst_7 {dimension_numbers = #tpu.dot_dimension_numbers<[1], [0], [0], [1], [0, 0, 1, 1], [], []>} : vector<8x9xf32>, vector<9x128xf32>, vector<8x128xf32> -> vector<8x128xf32>
    %6 = arith.addf %2, %5 : vector<8x128xf32>
    %c0_8 = arith.constant 0 : index
    %c0_9 = arith.constant 0 : index
    %7 = vector.load %arg5[%c0_8, %c0_9] : memref<8x128xf32, #tpu.memory_space<vmem>>, vector<8x128xf32>
    tpu.vector_store %arg5[%c0_8, %c0_9], %6 {strides = array<i32>} : memref<8x128xf32, #tpu.memory_space<vmem>>, vector<8x128xf32>,
    return
  }
  func.func @transform_0(%arg0: i32) -> (i32, i32) {
    %c0_i32 = arith.constant 0 : i32
    %c0_i32_0 = arith.constant 0 : i32
    return %arg0, %c0_i32 : i32, i32
  }
  func.func @transform_1(%arg0: i32) -> (i32, i32) {
    %c0_i32 = arith.constant 0 : i32
    %c0_i32_0 = arith.constant 0 : i32
    return %arg0, %c0_i32 : i32, i32
  }
  func.func @transform_2(%arg0: i32) -> (i32, i32) {
    %c0_i32 = arith.constant 0 : i32
    %c0_i32_0 = arith.constant 0 : i32
    %c0_i32_1 = arith.constant 0 : i32
    return %c0_i32, %c0_i32_0 : i32, i32
  }
  func.func @transform_3(%arg0: i32) -> (i32, i32) {
    %c0_i32 = arith.constant 0 : i32
    %c0_i32_0 = arith.constant 0 : i32
    %c0_i32_1 = arith.constant 0 : i32
    return %c0_i32, %c0_i32_0 : i32, i32
  }
  func.func @transform_4(%arg0: i32) -> (i32, i32) {
    %c0_i32 = arith.constant 0 : i32
    %c0_i32_0 = arith.constant 0 : i32
    return %arg0, %c0_i32 : i32, i32
  }
}

</mosaic_0001>

<bundles_post_ra>
// kernel: mymodel_forward.1
= control target key start
LH: loop header
LB: loop body
LE: loop exit
PB: predicated region body
PF: predicated region fallthrough
CT: control target
= control target key end

     0   :  { %9 = vsyncpa [#allocation3], 0  ;;  %s436_s18 = smov [#allocation2]   ;;  %s437_s20 = smov 128   ;;  %s503_s0 = inlined_call_operand.vmem [shape: f32[2,1024], index: 0, kind: input, shape index: {}]   ;;  %s504_s1 = inlined_call_operand.vmem [shape: f32[2,9], index: 1, kind: input, shape index: {}]   ;;  %s505_s2 = inlined_call_operand.hbm [shape: f32[1024,128], index: 2, kind: input, shape index: {}]   ;;  %s506_s3 = inlined_call_operand.vmem [shape: f32[9,128], index: 3, kind: input, shape index: {}]   ;;  %s507_s4 = inlined_call_operand.vmem [shape: f32[8,128], index: 4, kind: output, shape index: {}]  }
   0x1   :  { %s18_s17 = sshll.u32 %s505_s2, 4  ;;  %s20_s19 = sshll.u32 %s436_s18, 4  ;;  %s19_s17 = int_to_ptr.hbm [resolvable:$true] %s18_s17  ;;  %s21_s19 = int_to_ptr.vmem [resolvable:$true] %s20_s19 }
   0x2   :  { %s438_s21 = smov 8  }
   0x3   :  { %26 = dma.hbm_to_vmem [thread:$0]  %s19_s17, 16384, %s21_s19, [#allocation3], %s437_s20, %s437_s20, %s438_s21  }
   0x4   :  { %434 = dma.done.wait [#allocation3], 16384  }
   0x5   :  { %435 = vsyncadd [#allocation3], 4294950912  ;;  %v56_v0 = vld [vmem:[#allocation2 + $0x78] sm:$0xff]  ;;  %v55_v2 = vld [vmem:[#allocation2 + $0x70] sm:$0xff]  ;;  %vm176_vm0 = vcmask 1040384   ;;  %vm172_vm1 = vcmask 72704  }
   0x6   :  { %v72_v1 = vld [vmem:[#allocation2 + $0xf8] sm:$0xff]  ;;  %239 = vmatpush.msra.mxu1 %v56_v0  ;;  %v71_v3 = vld [vmem:[#allocation2 + $0xf0] sm:$0xff]  ;;  %v54_v5 = vld [vmem:[#allocation2 + $0x68] sm:$0xff] }
   0x7   :  { %259 = vmatpush.msra.mxu2 %v72_v1  ;;  %v88_v4 = vld [vmem:[#allocation2 + $0x178] sm:$0xff]  ;;  %v70_v6 = vld [vmem:[#allocation2 + $0xe8] sm:$0xff]  ;;  %v87_v7 = vld [vmem:[#allocation2 + $0x170] sm:$0xff] }
   0x8   :  { %279 = vmatpush.msra.mxu3 %v88_v4  ;;  %240 = vmatpush.msra.mxu1 %v55_v2  ;;  %v86_v8 = vld [vmem:[#allocation2 + $0x168] sm:$0xff]  ;;  %v171_v9 = vld [vmem:[%s506_s3 + $0x8] sm:$0x1]  ;;  %v170_v13 = vld [vmem:[%s506_s3] sm:$0xff] }
   0x9   :  { %260 = vmatpush.msra.mxu2 %v71_v3  ;;  %v53_v10 = vld [vmem:[#allocation2 + $0x60] sm:$0xff]  ;;  %405 = vmatpush.msk.msra.mxu0 %vm176_vm0, %v171_v9  ;;  %v52_v14 = vld [vmem:[#allocation2 + $0x58] sm:$0xff]  ;;  %v103_v18 = vld [vmem:[#allocation2 + $0x1f0] sm:$0xff] }
   0xa   :  { %280 = vmatpush.msra.mxu3 %v87_v7  ;;  %v69_v11 = vld [vmem:[#allocation2 + $0xe0] sm:$0xff]  ;;  %241 = vmatpush.msra.mxu1 %v54_v5  ;;  %v68_v15 = vld [vmem:[#allocation2 + $0xd8] sm:$0xff]  ;;  %v51_v19 = vld [vmem:[#allocation2 + $0x50] sm:$0xff] }
   0xb   :  { %261 = vmatpush.msra.mxu2 %v70_v6  ;;  %v85_v12 = vld [vmem:[#allocation2 + $0x160] sm:$0xff]  ;;  %195 = vmatpush.msra.mxu0 %v170_v13  ;;  %v104_v16 = vld [vmem:[#allocation2 + $0x1f8] sm:$0xff]  ;;  %v67_v20 = vld [vmem:[#allocation2 + $0xd0] sm:$0xff] }
   0xc   :  { %281 = vmatpush.msra.mxu3 %v86_v8  ;;  %242 = vmatpush.msra.mxu1 %v53_v10  ;;  %v84_v17 = vld [vmem:[#allocation2 + $0x158] sm:$0xff]  ;;  %v83_v21 = vld [vmem:[#allocation2 + $0x150] sm:$0xff]  ;;  %v102_v22 = vld [vmem:[#allocation2 + $0x1e8] sm:$0xff] }
   0xd   :  { %262 = vmatpush.msra.mxu2 %v69_v11  ;;  %299 = vmatpush.msrb.mxu0 %v104_v16  ;;  %v50_v23 = vld [vmem:[#allocation2 + $0x48] sm:$0xff]  ;;  %v101_v26 = vld [vmem:[#allocation2 + $0x1e0] sm:$0xff]  ;;  %v100_v30 = vld [vmem:[#allocation2 + $0x1d8] sm:$0xff] }
   0xe   :  { %282 = vmatpush.msra.mxu3 %v85_v12  ;;  %243 = vmatpush.msra.mxu1 %v52_v14  ;;  %v66_v24 = vld [vmem:[#allocation2 + $0xc8] sm:$0xff]  ;;  %v49_v27 = vld [vmem:[#allocation2 + $0x40] sm:$0xff]  ;;  %v48_v31 = vld [vmem:[#allocation2 + $0x38] sm:$0xff] }
   0xf   :  { %263 = vmatpush.msra.mxu2 %v68_v15  ;;  %300 = vmatpush.msrb.mxu0 %v103_v18  ;;  %v82_v25 = vld [vmem:[#allocation2 + $0x148] sm:$0xff]  ;;  %v65_v28 = vld [vmem:[#allocation2 + $0xc0] sm:$0xff]  ;;  %v64_v32 = vld [vmem:[#allocation2 + $0xb8] sm:$0xff] }
  0x10   :  { %283 = vmatpush.msra.mxu3 %v84_v17  ;;  %244 = vmatpush.msra.mxu1 %v51_v19  ;;  %v81_v29 = vld [vmem:[#allocation2 + $0x140] sm:$0xff]  ;;  %v80_v33 = vld [vmem:[#allocation2 + $0x138] sm:$0xff]  ;;  %v99_v34 = vld [vmem:[#allocation2 + $0x1d0] sm:$0xff] }
  0x11   :  { %264 = vmatpush.msra.mxu2 %v67_v20  ;;  %301 = vmatpush.msrb.mxu0 %v102_v22  ;;  %v47_v35 = vld [vmem:[#allocation2 + $0x30] sm:$0xff]  ;;  %v98_v38 = vld [vmem:[#allocation2 + $0x1c8] sm:$0xff]  ;;  %v97_v42 = vld [vmem:[#allocation2 + $0x1c0] sm:$0xff] }
  0x12   :  { %284 = vmatpush.msra.mxu3 %v83_v21  ;;  %245 = vmatpush.msra.mxu1 %v50_v23  ;;  %v63_v36 = vld [vmem:[#allocation2 + $0xb0] sm:$0xff]  ;;  %v46_v39 = vld [vmem:[#allocation2 + $0x28] sm:$0xff]  ;;  %v45_v43 = vld [vmem:[#allocation2 + $0x20] sm:$0xff] }
  0x13   :  { %265 = vmatpush.msra.mxu2 %v66_v24  ;;  %302 = vmatpush.msrb.mxu0 %v101_v26  ;;  %v79_v37 = vld [vmem:[#allocation2 + $0x130] sm:$0xff]  ;;  %v62_v40 = vld [vmem:[#allocation2 + $0xa8] sm:$0xff]  ;;  %v61_v44 = vld [vmem:[#allocation2 + $0xa0] sm:$0xff] }
  0x14   :  { %285 = vmatpush.msra.mxu3 %v82_v25  ;;  %246 = vmatpush.msra.mxu1 %v49_v27  ;;  %v78_v41 = vld [vmem:[#allocation2 + $0x128] sm:$0xff]  ;;  %v77_v45 = vld [vmem:[#allocation2 + $0x120] sm:$0xff]  ;;  %v96_v46 = vld [vmem:[#allocation2 + $0x1b8] sm:$0xff] }
  0x15   :  { %266 = vmatpush.msra.mxu2 %v65_v28  ;;  %303 = vmatpush.msrb.mxu0 %v100_v30  ;;  %v44_v47 = vld [vmem:[#allocation2 + $0x18] sm:$0xff]  ;;  %v43_v49 = vld [vmem:[#allocation2 + $0x10] sm:$0xff]  ;;  %v35_v54 = vld [vmem:[%s503_s0 + $0x10] sm:$0xff] }
  0x16   :  { %286 = vmatpush.msra.mxu3 %v81_v29  ;;  %247 = vmatpush.msra.mxu1 %v48_v31  ;;  %v60_v48 = vld [vmem:[#allocation2 + $0x98] sm:$0xff]  ;;  %v59_v50 = vld [vmem:[#allocation2 + $0x90] sm:$0xff]  ;;  %v94_v57 = vld [vmem:[#allocation2 + $0x1a8] sm:$0xff]  ;;  %210 = vst [vmem:[#allocation1 + $0x1] ss:$4 sm:$0xff] %v35_v54 }
  0x17   :  { %267 = vmatpush.msra.mxu2 %v64_v32  ;;  %304 = vmatpush.msrb.mxu0 %v99_v34  ;;  %v76_v51 = vld [vmem:[#allocation2 + $0x118] sm:$0xff]  ;;  %v95_v52 = vld [vmem:[#allocation2 + $0x1b0] sm:$0xff]  ;;  %v39_v58 = vld [vmem:[%s503_s0 + $0x30] sm:$0xff] }
  0x18   :  { %287 = vmatpush.msra.mxu3 %v80_v33  ;;  %248 = vmatpush.msra.mxu1 %v47_v35  ;;  %v33_v53 = vld [vmem:[%s503_s0] sm:$0xff]  ;;  %v75_v56 = vld [vmem:[#allocation2 + $0x110] sm:$0xff]  ;;  %v42_v59 = vld [vmem:[#allocation2 + $0x8] sm:$0xff]  ;;  %214 = vst [vmem:[#allocation1 + $0x3] ss:$4 sm:$0xff] %v39_v58 }
  0x19   :  { %268 = vmatpush.msra.mxu2 %v63_v36  ;;  %305 = vmatpush.msrb.mxu0 %v98_v38  ;;  %v37_v55 = vld [vmem:[%s503_s0 + $0x20] sm:$0xff]  ;;  %208 = vst [vmem:[#allocation1] ss:$4 sm:$0xff] %v33_v53  ;;  %v58_v60 = vld [vmem:[#allocation2 + $0x88] sm:$0xff]  ;;  %v93_v62 = vld [vmem:[#allocation2 + $0x1a0] sm:$0xff] }
  0x1a   :  { %288 = vmatpush.msra.mxu3 %v79_v37  ;;  %249 = vmatpush.msra.mxu1 %v46_v39  ;;  %v74_v61 = vld [vmem:[#allocation2 + $0x108] sm:$0xff]  ;;  %212 = vst [vmem:[#allocation1 + $0x2] ss:$4 sm:$0xff] %v37_v55  ;;  %v41_v63 = vld [vmem:[#allocation2] sm:$0xff]  ;;  %v120_v1 = vld [vmem:[#allocation2 + $0x278] sm:$0xff] }
  0x1b   :  { %269 = vmatpush.msra.mxu2 %v62_v40  ;;  %306 = vmatpush.msrb.mxu0 %v97_v42  ;;  %v57_v0 = vld [vmem:[#allocation2 + $0x80] sm:$0xff]  ;;  %v136_v2 = vld [vmem:[#allocation2 + $0x2f8] sm:$0xff]  ;;  %v119_v5 = vld [vmem:[#allocation2 + $0x270] sm:$0xff] }
  0x1c   :  { %289 = vmatpush.msra.mxu3 %v78_v41  ;;  %250 = vmatpush.msra.mxu1 %v45_v43  ;;  %v73_v3 = vld [vmem:[#allocation2 + $0x100] sm:$0xff]  ;;  %v92_v4 = vld [vmem:[#allocation2 + $0x198] sm:$0xff]  ;;  %v135_v6 = vld [vmem:[#allocation2 + $0x2f0] sm:$0xff] }
  0x1d   :  { %270 = vmatpush.msra.mxu2 %v61_v44  ;;  %307 = vmatpush.msrb.mxu0 %v96_v46  ;;  %v152_v7 = vld [vmem:[#allocation2 + $0x378] sm:$0xff]  ;;  %v91_v8 = vld [vmem:[#allocation2 + $0x190] sm:$0xff]  ;;  %v118_v9 = vld [vmem:[#allocation2 + $0x268] sm:$0xff] }
  0x1e   :  { %290 = vmatpush.msra.mxu3 %v77_v45  ;;  %251 = vmatpush.msra.mxu1 %v44_v47  ;;  %v134_v10 = vld [vmem:[#allocation2 + $0x2e8] sm:$0xff]  ;;  %v151_v11 = vld [vmem:[#allocation2 + $0x370] sm:$0xff]  ;;  %v117_v13 = vld [vmem:[#allocation2 + $0x260] sm:$0xff] }
  0x1f   :  { %271 = vmatpush.msra.mxu2 %v60_v48  ;;  %308 = vmatpush.msrb.mxu0 %v95_v52  ;;  %v133_v14 = vld [vmem:[#allocation2 + $0x2e0] sm:$0xff]  ;;  %v150_v15 = vld [vmem:[#allocation2 + $0x368] sm:$0xff]  ;;  %v169_v17 = vld [vmem:[%s504_s1] sm:$0xff] }
  0x20   :  { %291 = vmatpush.msra.mxu3 %v76_v51  ;;  %252 = vmatpush.msra.mxu1 %v43_v49  ;;  %v90_v16 = vld [vmem:[#allocation2 + $0x188] sm:$0xff]  ;;  %v116_v19 = vld [vmem:[#allocation2 + $0x258] sm:$0xff]  ;;  %v149_v21 = vld [vmem:[#allocation2 + $0x360] sm:$0xff] }
  0x21   :  { %272 = vmatpush.msra.mxu2 %v59_v50  ;;  %309 = vmatpush.msrb.mxu0 %v94_v57  ;;  %v224_v12 = vld.sshfl [vmem:[#allocation1 + $0x8] sm:$0xff pattern:$0x73625140]  ;;  %v225_v18 = vld.sshfl [vmem:[#allocation1 + $0x10] sm:$0xff pattern:$0x73625140] }
  0x22   :  { %292 = vmatpush.msra.mxu3 %v75_v56  ;;  %253 = vmatpush.msra.mxu1 %v42_v59  ;;  %v132_v20 = vld [vmem:[#allocation2 + $0x2d8] sm:$0xff]  ;;  %v89_v22 = vld [vmem:[#allocation2 + $0x180] sm:$0xff]  ;;  %v131_v24 = vld [vmem:[#allocation2 + $0x2d0] sm:$0xff] }
  0x23   :  { %273 = vmatpush.msra.mxu2 %v58_v60  ;;  %310 = vmatpush.msrb.mxu0 %v93_v62  ;;  %v223_v23 = vld.sshfl [vmem:[#allocation1] sm:$0xff pattern:$0x73625140]  ;;  %v115_v25 = vld [vmem:[#allocation2 + $0x250] sm:$0xff]  ;;  %v130_v28 = vld [vmem:[#allocation2 + $0x2c8] sm:$0xff] }
  0x24   :  { %293 = vmatpush.msra.mxu3 %v74_v61  ;;  %254 = vmatpush.msra.mxu1 %v41_v63  ;;  %v148_v26 = vld [vmem:[#allocation2 + $0x358] sm:$0xff]  ;;  %v114_v29 = vld [vmem:[#allocation2 + $0x248] sm:$0xff]  ;;  %v147_v30 = vld [vmem:[#allocation2 + $0x350] sm:$0xff] }
  0x25   :  { %274 = vmatpush.msra.mxu2 %v57_v0  ;;  %311 = vmatpush.msrb.mxu0 %v92_v4  ;;  %v168_v27 = vld [vmem:[#allocation2 + $0x3f8] sm:$0xff]  ;;  %v167_v31 = vld [vmem:[#allocation2 + $0x3f0] sm:$0xff]  ;;  %v113_v32 = vld [vmem:[#allocation2 + $0x240] sm:$0xff] }
  0x26   :  { %319 = vmatpush.msrb.mxu1 %v120_v1  ;;  %294 = vmatpush.msra.mxu3 %v73_v3  ;;  %v129_v33 = vld [vmem:[#allocation2 + $0x2c0] sm:$0xff]  ;;  %v146_v34 = vld [vmem:[#allocation2 + $0x348] sm:$0xff]  ;;  %v36_v36 = vld [vmem:[%s503_s0 + $0x18] sm:$0xff] }
  0x27   :  { %339 = vmatpush.msrb.mxu2 %v136_v2  ;;  %312 = vmatpush.msrb.mxu0 %v91_v8  ;;  %v34_v35 = vld [vmem:[%s503_s0 + $0x8] sm:$0xff]  ;;  %v166_v38 = vld [vmem:[#allocation2 + $0x3e8] sm:$0xff]  ;;  %v128_v39 = vld [vmem:[#allocation2 + $0x2b8] sm:$0xff]  ;;  %218 = vst [vmem:[#allocation1 + $0x21] ss:$4 sm:$0xff] %v36_v36 }
  0x28   :  { %320 = vmatpush.msrb.mxu1 %v119_v5  ;;  %359 = vmatpush.msrb.mxu3 %v152_v7  ;;  %v38_v37 = vld [vmem:[%s503_s0 + $0x28] sm:$0xff]  ;;  %v40_v40 = vld [vmem:[%s503_s0 + $0x38] sm:$0xff]  ;;  %216 = vst [vmem:[#allocation1 + $0x20] ss:$4 sm:$0xff] %v34_v35  ;;  %v112_v42 = vld [vmem:[#allocation2 + $0x238] sm:$0xff] }
  0x29   :  { %340 = vmatpush.msrb.mxu2 %v135_v6  ;;  %313 = vmatpush.msrb.mxu0 %v90_v16  ;;  %v226_v41 = vld.sshfl [vmem:[#allocation1 + $0x18] sm:$0xff pattern:$0x73625140]  ;;  %v145_v43 = vld [vmem:[#allocation2 + $0x340] sm:$0xff]  ;;  %220 = vst [vmem:[#allocation1 + $0x22] ss:$4 sm:$0xff] %v38_v37 }
  0x2a   :  { %321 = vmatpush.msrb.mxu1 %v118_v9  ;;  %360 = vmatpush.msrb.mxu3 %v151_v11  ;;  %v165_v44 = vld [vmem:[#allocation2 + $0x3e0] sm:$0xff]  ;;  %v111_v45 = vld [vmem:[#allocation2 + $0x230] sm:$0xff]  ;;  %222 = vst [vmem:[#allocation1 + $0x23] ss:$4 sm:$0xff] %v40_v40  ;;  %v144_v47 = vld [vmem:[#allocation2 + $0x338] sm:$0xff] }
  0x2b   :  { %341 = vmatpush.msrb.mxu2 %v134_v10  ;;  %406 = vmatmul.msk.f32.vlgmr.msra.gmra.mxu0 %vm172_vm1, %v169_v17  ;;  %v127_v46 = vld [vmem:[#allocation2 + $0x2b0] sm:$0xff]  ;;  %v164_v48 = vld [vmem:[#allocation2 + $0x3d8] sm:$0xff]  ;;  %v110_v49 = vld [vmem:[#allocation2 + $0x228] sm:$0xff] }
  0x2c   :  { %275 = vmatmul.f32.vlgmr.msra.gmra.mxu2 %v224_v12  ;;  %322 = vmatpush.msrb.mxu1 %v117_v13  ;;  %v126_v50 = vld [vmem:[#allocation2 + $0x2a8] sm:$0xff]  ;;  %v143_v51 = vld [vmem:[#allocation2 + $0x330] sm:$0xff]  ;;  %v109_v53 = vld [vmem:[#allocation2 + $0x220] sm:$0xff] }
  0x2d   :  { %342 = vmatpush.msrb.mxu2 %v133_v14  ;;  %361 = vmatpush.msrb.mxu3 %v150_v15  ;;  %v163_v52 = vld [vmem:[#allocation2 + $0x3d0] sm:$0xff]  ;;  %v125_v54 = vld [vmem:[#allocation2 + $0x2a0] sm:$0xff]  ;;  %v142_v55 = vld [vmem:[#allocation2 + $0x328] sm:$0xff] }
  0x2e   :  { %295 = vmatmul.f32.vlgmr.msra.gmra.mxu3 %v225_v18  ;;  %323 = vmatpush.msrb.mxu1 %v116_v19  ;;  %v162_v56 = vld [vmem:[#allocation2 + $0x3c8] sm:$0xff]  ;;  %v108_v57 = vld [vmem:[#allocation2 + $0x218] sm:$0xff]  ;;  %v141_v59 = vld [vmem:[#allocation2 + $0x320] sm:$0xff] }
  0x2f   :  { %343 = vmatpush.msrb.mxu2 %v132_v20  ;;  %362 = vmatpush.msrb.mxu3 %v149_v21  ;;  %v124_v58 = vld [vmem:[#allocation2 + $0x298] sm:$0xff]  ;;  %v161_v60 = vld [vmem:[#allocation2 + $0x3c0] sm:$0xff]  ;;  %v107_v61 = vld [vmem:[#allocation2 + $0x210] sm:$0xff] }
  0x30   :  { %314 = vmatpush.msrb.mxu0 %v89_v22  ;;  %255 = vmatmul.f32.vlgmr.msra.gmra.mxu1 %v223_v23  ;;  %v123_v62 = vld [vmem:[#allocation2 + $0x290] sm:$0xff]  ;;  %v140_v63 = vld [vmem:[#allocation2 + $0x318] sm:$0xff]  ;;  %v106_v1 = vld [vmem:[#allocation2 + $0x208] sm:$0xff] }
  0x31   :  { %344 = vmatpush.msrb.mxu2 %v131_v24  ;;  %324 = vmatpush.msrb.mxu1 %v115_v25  ;;  %v160_v0 = vld [vmem:[#allocation2 + $0x3b8] sm:$0xff]  ;;  %v122_v2 = vld [vmem:[#allocation2 + $0x288] sm:$0xff]  ;;  %v139_v3 = vld [vmem:[#allocation2 + $0x310] sm:$0xff] }
  0x32   :  { %363 = vmatpush.msrb.mxu3 %v148_v26  ;;  %379 = vmatpush.msra.mxu0 %v168_v27  ;;  %v159_v4 = vld [vmem:[#allocation2 + $0x3b0] sm:$0xff]  ;;  %v105_v5 = vld [vmem:[#allocation2 + $0x200] sm:$0xff]  ;;  %v138_v7 = vld [vmem:[#allocation2 + $0x308] sm:$0xff] }
  0x33   :  { %345 = vmatpush.msrb.mxu2 %v130_v28  ;;  %325 = vmatpush.msrb.mxu1 %v114_v29  ;;  %v121_v6 = vld [vmem:[#allocation2 + $0x280] sm:$0xff]  ;;  %v158_v8 = vld [vmem:[#allocation2 + $0x3a8] sm:$0xff]  ;;  %v227_v9 = vld.sshfl [vmem:[#allocation1 + $0x20] sm:$0xff pattern:$0x73625140] }
  0x34   :  { %364 = vmatpush.msrb.mxu3 %v147_v30  ;;  %380 = vmatpush.msra.mxu0 %v167_v31  ;;  %v228_v10 = vld.sshfl [vmem:[#allocation1 + $0x28] sm:$0xff pattern:$0x73625140]  ;;  %v229_v13 = vld.sshfl [vmem:[#allocation1 + $0x30] sm:$0xff pattern:$0x73625140] }
  0x35   :  { %346 = vmatpush.msrb.mxu2 %v129_v33  ;;  %326 = vmatpush.msrb.mxu1 %v113_v32  ;;  %v137_v11 = vld [vmem:[#allocation2 + $0x300] sm:$0xff]  ;;  %v156_v14 = vld [vmem:[#allocation2 + $0x398] sm:$0xff]  ;;  %v155_v15 = vld [vmem:[#allocation2 + $0x390] sm:$0xff] }
  0x36   :  { %365 = vmatpush.msrb.mxu3 %v146_v34  ;;  %381 = vmatpush.msra.mxu0 %v166_v38  ;;  %v157_v12 = vld [vmem:[#allocation2 + $0x3a0] sm:$0xff]  ;;  %v154_v16 = vld [vmem:[#allocation2 + $0x388] sm:$0xff]  ;;  %v230_v18 = vld.sshfl [vmem:[#allocation1 + $0x38] sm:$0xff pattern:$0x73625140] }
  0x37   :  { %347 = vmatpush.msrb.mxu2 %v128_v39  ;;  %315 = vmatmul.f32.vlgmr.msrb.gmra.mxu0 %v226_v41  ;;  %v153_v17 = vld [vmem:[#allocation2 + $0x380] sm:$0xff] }
  0x38   :  { %327 = vmatpush.msrb.mxu1 %v112_v42  ;;  %366 = vmatpush.msrb.mxu3 %v145_v43 }
  0x39   :  { %382 = vmatpush.msra.mxu0 %v165_v44  ;;  %348 = vmatpush.msrb.mxu2 %v127_v46 }
  0x3a   :  { %328 = vmatpush.msrb.mxu1 %v111_v45  ;;  %367 = vmatpush.msrb.mxu3 %v144_v47 }
  0x3b   :  { %383 = vmatpush.msra.mxu0 %v164_v48  ;;  %349 = vmatpush.msrb.mxu2 %v126_v50 }
  0x3c   :  { %329 = vmatpush.msrb.mxu1 %v110_v49  ;;  %368 = vmatpush.msrb.mxu3 %v143_v51 }
  0x3d   :  { %384 = vmatpush.msra.mxu0 %v163_v52  ;;  %350 = vmatpush.msrb.mxu2 %v125_v54 }
  0x3e   :  { %330 = vmatpush.msrb.mxu1 %v109_v53  ;;  %369 = vmatpush.msrb.mxu3 %v142_v55 }
  0x3f   :  { %385 = vmatpush.msra.mxu0 %v162_v56  ;;  %351 = vmatpush.msrb.mxu2 %v124_v58 }
  0x40   :  { %331 = vmatpush.msrb.mxu1 %v108_v57  ;;  %370 = vmatpush.msrb.mxu3 %v141_v59 }
  0x41   :  { %386 = vmatpush.msra.mxu0 %v161_v60  ;;  %352 = vmatpush.msrb.mxu2 %v123_v62 }
  0x42   :  { %332 = vmatpush.msrb.mxu1 %v107_v61  ;;  %371 = vmatpush.msrb.mxu3 %v140_v63 }
  0x43   :  { %387 = vmatpush.msra.mxu0 %v160_v0  ;;  %353 = vmatpush.msrb.mxu2 %v122_v2 }
  0x44   :  { %333 = vmatpush.msrb.mxu1 %v106_v1  ;;  %372 = vmatpush.msrb.mxu3 %v139_v3 }
  0x45   :  { %388 = vmatpush.msra.mxu0 %v159_v4  ;;  %354 = vmatpush.msrb.mxu2 %v121_v6 }
  0x46   :  { %334 = vmatpush.msrb.mxu1 %v105_v5  ;;  %373 = vmatpush.msrb.mxu3 %v138_v7 }
  0x47   :  { %389 = vmatpush.msra.mxu0 %v158_v8  ;;  %335 = vmatmul.f32.vlgmr.msrb.gmra.mxu1 %v227_v9 }
  0x48   :  { %355 = vmatmul.f32.vlgmr.msrb.gmra.mxu2 %v228_v10  ;;  %374 = vmatpush.msrb.mxu3 %v137_v11 }
  0x49   :  { %390 = vmatpush.msra.mxu0 %v157_v12  ;;  %375 = vmatmul.f32.vlgmr.msrb.gmra.mxu3 %v229_v13 }
  0x4b   :  { %391 = vmatpush.msra.mxu0 %v156_v14 }
  0x4d   :  { %392 = vmatpush.msra.mxu0 %v155_v15 }
  0x4f   :  { %393 = vmatpush.msra.mxu0 %v154_v16 }
  0x51   :  { %394 = vmatpush.msra.mxu0 %v153_v17 }
  0x52   :  { %395 = vmatmul.f32.vlgmr.msra.gmra.mxu0 %v230_v18 }
  0xa8   :  { %v197_v20 = vpop.f32.mrf.mxu0 }
  0xad   :  { %v256_v19 = vpop.f32.mrf.mxu1 }
  0xae   :  { %v257_v21 = vadd.f32 %v256_v19, %v197_v20 }
  0xaf   :  { %v276_v22 = vpop.f32.mrf.mxu2 }
  0xb0   :  { %v277_v23 = vadd.f32 %v276_v22, %v257_v21 }
  0xb1   :  { %v296_v24 = vpop.f32.mrf.mxu3 }
  0xb2   :  { %v297_v25 = vadd.f32 %v296_v24, %v277_v23 }
  0xb4   :  { %v316_v26 = vpop.f32.mrf.mxu0 }
  0xb5   :  { %v317_v28 = vadd.f32 %v316_v26, %v297_v25 }
  0xc4   :  { %v336_v27 = vpop.f32.mrf.mxu1 }
  0xc5   :  { %v337_v29 = vadd.f32 %v336_v27, %v317_v28 }
  0xcb   :  { %v356_v30 = vpop.f32.mrf.mxu2 }
  0xcc   :  { %v357_v31 = vadd.f32 %v356_v30, %v337_v29  ;;  %v376_v32 = vpop.f32.mrf.mxu3 }
  0xce   :  { %v377_v33 = vadd.f32 %v376_v32, %v357_v31 }
  0xcf   :  { %v396_v34 = vpop.f32.mrf.mxu0 }
  0xd0   :  { %v397_v35 = vadd.f32 %v396_v34, %v377_v33 }
  0xd2   :  { %399 = vst [vmem:[%s507_s4] sm:$0xff] %v397_v35 }
  0xd3   :  { %404 = vsyncpa [#allocation3], 1 }

</bundles_post_ra>
